<compile_context>
chip_gen: v7x
topology: tpu7x:2x2x1
jax: 0.10.0
libtpu: 0.0.40
codegen_flags: <defaults>
</compile_context>

<pallas_src>
import math

import jax
import jax.numpy as jnp
from jax.experimental import pallas as pl
from jax.experimental.pallas import tpu as pltpu


def make_lstm_cell_kernel(m, k, is_training):
    """Builds the Pallas kernel body (is_training is a static Python bool)."""
    mk = m * k

    def compute(tau_ref, g_ref, xh_ref, c0_ref, wz_ref, w4_ref,
                bz_ref, b4_ref, s_ref, r_ref, out_ref):
        xh = xh_ref[...]                       # (BN, n+m) f32
        c0 = c0_ref[...]                       # (BN, m)   f32
        bn = xh.shape[0]

        # ---- logit encoder (kept f32, tiny): logit = [x|h0] @ [W_xz;W_hz] + b ----
        logit = (jnp.dot(xh, wz_ref[...], preferred_element_type=jnp.float32)
                 + bz_ref[...])

        # softmax over the k cells -> q_z
        mx = jnp.max(logit, axis=1, keepdims=True)
        e = jnp.exp(logit - mx)
        q = e / jnp.sum(e, axis=1, keepdims=True)

        if is_training:
            # Gumbel-softmax (soft). Noise g ~ Gumbel(0,1) supplied by the wrapper.
            tau = tau_ref[0]
            gl = (logit + g_ref[...]) / tau
            gmx = jnp.max(gl, axis=1, keepdims=True)
            ge = jnp.exp(gl - gmx)
            z = ge / jnp.sum(ge, axis=1, keepdims=True)
        else:
            # hard one-hot of argmax(q_z) (first max index, like torch)
            iota = jax.lax.broadcasted_iota(jnp.int32, (bn, k), 1)
            qmax = jnp.max(q, axis=1, keepdims=True)
            idx = jnp.min(jnp.where(q >= qmax, iota, k), axis=1, keepdims=True)
            z = (iota == idx).astype(jnp.float32)

        # ---- 4 gates for the k parallel LSTMs: one fused bf16 matmul, f32 acc ----
        gates = (jnp.dot(xh.astype(jnp.bfloat16), w4_ref[...],
                         preferred_element_type=jnp.float32)
                 + b4_ref[...])                                   # (BN, 4*mk)

        i_g = gates[:, 0 * mk:1 * mk]
        g_g = gates[:, 1 * mk:2 * mk]
        f_g = gates[:, 2 * mk:3 * mk]
        o_g = gates[:, 3 * mk:4 * mk]

        c0k = jnp.tile(c0, (1, k))                                # (BN, mk)
        ct = jax.nn.sigmoid(f_g) * c0k + jax.nn.sigmoid(i_g) * jnp.tanh(g_g)
        ht = jax.nn.sigmoid(o_g) * jnp.tanh(ct)

        # z-weighted mixture, lane-dense via selector matmuls:
        #   zw[n, c]   = z[n, c // m]          (z @ S,  S: (k, mk))
        #   h_t[n, mm] = sum_c (ht*zw)[n, c] * (c % m == mm)   ((ht*zw) @ R, R: (mk, m))
        zw = jnp.dot(z, s_ref[...], preferred_element_type=jnp.float32)
        h_t = jnp.dot(ht * zw, r_ref[...], preferred_element_type=jnp.float32)
        c_t = jnp.dot(ct * zw, r_ref[...], preferred_element_type=jnp.float32)

        # single lane-dense packed output slab: [z | q | h_t | c_t | pad]
        out_ref[...] = jnp.zeros_like(out_ref)
        out_ref[:, 0:k] = z
        out_ref[:, k:2 * k] = q
        out_ref[:, 2 * k:2 * k + m] = h_t
        out_ref[:, 2 * k + m:2 * k + 2 * m] = c_t

    if is_training:
        def kernel(tau_ref, g_ref, xh_ref, c0_ref, wz_ref, w4_ref,
                   bz_ref, b4_ref, s_ref, r_ref, out_ref):
            compute(tau_ref, g_ref, xh_ref, c0_ref, wz_ref, w4_ref,
                    bz_ref, b4_ref, s_ref, r_ref, out_ref)
    else:
        def kernel(xh_ref, c0_ref, wz_ref, w4_ref,
                   bz_ref, b4_ref, s_ref, r_ref, out_ref):
            compute(None, None, xh_ref, c0_ref, wz_ref, w4_ref,
                    bz_ref, b4_ref, s_ref, r_ref, out_ref)
    return kernel


def lstm_cell_forward(x, tau, s_t, params, is_training, rng_key=None):
    """Pallas-backed equivalent of LSTMCell.forward. Returns (z, q_z, h_t, c_t)."""
    h0, c0 = s_t
    W_xz, W_hz, W_x4, W_h4, b_xz, b_4g = params
    N, n = x.shape
    m = h0.shape[1]
    k = W_xz.shape[1]
    mk = m * k

    BN = 8                                    # batch tile (sublane-aligned)
    Np = ((N + BN - 1) // BN) * BN
    width = 2 * k + 2 * m
    P = ((width + 127) // 128) * 128          # lane-dense packed output width

    # ---- wrapper-side layout plumbing (cheap XLA ops) ----
    xh = jnp.concatenate([x, h0], axis=1).astype(jnp.float32)        # (N, n+m)
    Wz = jnp.concatenate([W_xz, W_hz], axis=0).astype(jnp.float32)   # (n+m, k)
    W4 = jnp.concatenate([W_x4, W_h4], axis=0).astype(jnp.bfloat16)  # (n+m, 4mk)
    bz = b_xz.reshape(1, k).astype(jnp.float32)
    b4 = b_4g.reshape(1, 4 * mk).astype(jnp.float32)

    col = jnp.arange(mk, dtype=jnp.int32)
    sel_s = (col[None, :] // m
             == jnp.arange(k, dtype=jnp.int32)[:, None]).astype(jnp.float32)   # (k, mk)
    sel_r = (col[:, None] % m
             == jnp.arange(m, dtype=jnp.int32)[None, :]).astype(jnp.float32)   # (mk, m)

    c0f = c0.astype(jnp.float32)
    if Np != N:
        xh = jnp.pad(xh, ((0, Np - N), (0, 0)))
        c0f = jnp.pad(c0f, ((0, Np - N), (0, 0)))

    rowmap = lambda i: (i, 0)
    constmap = lambda i: (0, 0)

    in_specs = []
    args = []
    if is_training:
        assert rng_key is not None, "training mode needs an rng_key for Gumbel noise"
        g = jax.random.gumbel(rng_key, (N, k), dtype=jnp.float32)
        if Np != N:
            g = jnp.pad(g, ((0, Np - N), (0, 0)))
        in_specs += [pl.BlockSpec(memory_space=pltpu.MemorySpace.SMEM),   # tau (1,)
                     pl.BlockSpec((BN, k), rowmap)]                       # gumbel noise
        args += [jnp.asarray([tau], dtype=jnp.float32), g]

    in_specs += [
        pl.BlockSpec((BN, n + m), rowmap),       # [x | h0]
        pl.BlockSpec((BN, m), rowmap),           # c0
        pl.BlockSpec((n + m, k), constmap),      # stacked logit weights (resident)
        pl.BlockSpec((n + m, 4 * mk), constmap), # stacked gate weights bf16 (resident)
        pl.BlockSpec((1, k), constmap),          # b_xz
        pl.BlockSpec((1, 4 * mk), constmap),     # b_4gates
        pl.BlockSpec((k, mk), constmap),         # selector S
        pl.BlockSpec((mk, m), constmap),         # selector R
    ]
    args += [xh, c0f, Wz, W4, bz, b4, sel_s, sel_r]

    kernel = make_lstm_cell_kernel(m, k, is_training)

    packed = pl.pallas_call(
        kernel,
        out_shape=jax.ShapeDtypeStruct((Np, P), jnp.float32),
        grid=(Np // BN,),
        in_specs=in_specs,
        out_specs=pl.BlockSpec((BN, P), rowmap),
        compiler_params=pltpu.CompilerParams(
            dimension_semantics=("parallel",),
            vmem_limit_bytes=32 * 1024 * 1024),
    )(*args)

    packed = packed[:N]
    z = packed[:, 0:k]
    q = packed[:, k:2 * k]
    h_t = packed[:, 2 * k:2 * k + m]
    c_t = packed[:, 2 * k + m:2 * k + 2 * m]
    return z, q, h_t, c_t


def ref_forward(x, h0, c0, params, k, tau=None, g=None, training=False):
    """Pure-JAX (f32) reference matching the torch module semantics."""
    W_xz, W_hz, W_x4, W_h4, b_xz, b_4g = params
    N, m = h0.shape
    logit = x @ W_xz + b_xz[None, :] + h0 @ W_hz
    q = jax.nn.softmax(logit, axis=1)
    if training:
        z = jax.nn.softmax((logit + g) / tau, axis=1)
    else:
        z = jax.nn.one_hot(jnp.argmax(q, axis=1), k, dtype=jnp.float32)
    gates = x @ W_x4 + h0 @ W_h4 + b_4g[None, :]
    I, G, F, O = jnp.split(gates, 4, axis=1)
    C0 = jnp.tile(c0, (1, k))
    Ct = jax.nn.sigmoid(F) * C0 + jax.nn.sigmoid(I) * jnp.tanh(G)
    Ht = jax.nn.sigmoid(O) * jnp.tanh(Ct)
    Ct3 = Ct.reshape(N, k, m)
    Ht3 = Ht.reshape(N, k, m)
    h_t = jnp.einsum('nkm,nk->nm', Ht3, z)
    c_t = jnp.einsum('nkm,nk->nm', Ct3, z)
    return z, q, h_t, c_t


if __name__ == "__main__":
    # Small synthetic sizes consistent with the module's forward signature.
    N, n, m, k = 8, 16, 32, 4
    tau = 1.0

    key = jax.random.PRNGKey(0)
    ks = jax.random.split(key, 9)

    # Deterministic parameter init mirroring reset_parameters() (uniform +-stdv).
    stdv1 = 1.0 / math.sqrt(k)            # W_xz.size(1) == k
    stdv2 = 1.0 / math.sqrt(k)            # W_hz.size(1) == k
    stdv3 = 1.0 / math.sqrt(4 * m * k)    # W_x_4gates.size(1)
    stdv4 = 1.0 / math.sqrt(4 * m * k)    # W_h_4gates.size(1)
    W_xz = jax.random.uniform(ks[0], (n, k), jnp.float32, -stdv1, stdv1)
    W_hz = jax.random.uniform(ks[1], (m, k), jnp.float32, -stdv2, stdv2)
    W_x4 = jax.random.uniform(ks[2], (n, 4 * m * k), jnp.float32, -stdv3, stdv3)
    W_h4 = jax.random.uniform(ks[3], (m, 4 * m * k), jnp.float32, -stdv4, stdv4)
    b_xz = jax.random.uniform(ks[4], (k,), jnp.float32, -stdv1, stdv1)
    b_4g = jax.random.uniform(ks[5], (4 * m * k,), jnp.float32, -stdv4, stdv4)
    params = (W_xz, W_hz, W_x4, W_h4, b_xz, b_4g)

    x = jax.random.normal(ks[6], (N, n), jnp.float32)
    h0 = jax.random.normal(ks[7], (N, m), jnp.float32)
    c0 = jax.random.normal(ks[8], (N, m), jnp.float32)

    noise_key = jax.random.PRNGKey(1234)

    # Eval path (deterministic: hard one-hot from argmax of q_z).
    z_e, q_e, h_e, c_e = jax.block_until_ready(
        lstm_cell_forward(x, tau, (h0, c0), params, is_training=False))

    # Training path (Gumbel-softmax; noise drawn from jax.random, shared with ref).
    z_t, q_t, h_t, c_t = jax.block_until_ready(
        lstm_cell_forward(x, tau, (h0, c0), params, is_training=True,
                          rng_key=noise_key))

    # --- correctness checks against the pure-JAX f32 reference ---
    zr, qr, hr, cr = ref_forward(x, h0, c0, params, k, training=False)
    assert jnp.allclose(z_e, zr, atol=1e-5), "eval z mismatch"
    assert jnp.allclose(q_e, qr, atol=2e-3, rtol=2e-3), "eval q_z mismatch"
    assert jnp.allclose(h_e, hr, atol=2e-2, rtol=2e-2), "eval h_t mismatch"
    assert jnp.allclose(c_e, cr, atol=2e-2, rtol=2e-2), "eval c_t mismatch"

    g_ref = jax.random.gumbel(noise_key, (N, k), dtype=jnp.float32)
    zrt, qrt, hrt, crt = ref_forward(x, h0, c0, params, k,
                                     tau=tau, g=g_ref, training=True)
    assert jnp.allclose(z_t, zrt, atol=2e-3, rtol=2e-3), "train z mismatch"
    assert jnp.allclose(q_t, qrt, atol=2e-3, rtol=2e-3), "train q_z mismatch"
    assert jnp.allclose(h_t, hrt, atol=2e-2, rtol=2e-2), "train h_t mismatch"
    assert jnp.allclose(c_t, crt, atol=2e-2, rtol=2e-2), "train c_t mismatch"
    assert jnp.allclose(jnp.sum(z_t, axis=1), 1.0, atol=1e-4), "train z not normalized"

    print("KERNEL_OK")
</pallas_src>

<mosaic_0001>
module attributes {stable_mosaic.version = 11 : i64} {
  func.func @kernel(%arg0: i32, %arg1: memref<8x48xf32, #tpu.memory_space<vmem>>, %arg2: memref<8x32xf32, #tpu.memory_space<vmem>>, %arg3: memref<48x4xf32, #tpu.memory_space<vmem>>, %arg4: memref<48x512xbf16, #tpu.memory_space<vmem>>, %arg5: memref<1x4xf32, #tpu.memory_space<vmem>>, %arg6: memref<1x512xf32, #tpu.memory_space<vmem>>, %arg7: memref<4x128xf32, #tpu.memory_space<vmem>>, %arg8: memref<128x32xf32, #tpu.memory_space<vmem>>, %arg9: memref<8x128xf32, #tpu.memory_space<vmem>>) attributes {dimension_semantics = [#tpu.dimension_semantics<parallel>], iteration_bounds = array<i64: 1>, scalar_prefetch = 0 : i64, scratch_operands = 0 : i64, tpu.core_type = #tpu.core_type<tc>, window_params = [{transform_indices = @transform_0, window_bounds = array<i64: 8, 48>}, {transform_indices = @transform_1, window_bounds = array<i64: 8, 32>}, {pipeline_mode = #tpu.pipeline_mode<synchronous>, transform_indices = @transform_2, window_bounds = array<i64: 48, 4>}, {pipeline_mode = #tpu.pipeline_mode<synchronous>, transform_indices = @transform_3, window_bounds = array<i64: 48, 512>}, {pipeline_mode = #tpu.pipeline_mode<synchronous>, transform_indices = @transform_4, window_bounds = array<i64: 1, 4>}, {pipeline_mode = #tpu.pipeline_mode<synchronous>, transform_indices = @transform_5, window_bounds = array<i64: 1, 512>}, {pipeline_mode = #tpu.pipeline_mode<synchronous>, transform_indices = @transform_6, window_bounds = array<i64: 4, 128>}, {pipeline_mode = #tpu.pipeline_mode<synchronous>, transform_indices = @transform_7, window_bounds = array<i64: 128, 32>}, {transform_indices = @transform_8, window_bounds = array<i64: 8, 128>}]} {
    %c0 = arith.constant 0 : index
    %c0_0 = arith.constant 0 : index
    %0 = vector.load %arg1[%c0, %c0_0] : memref<8x48xf32, #tpu.memory_space<vmem>>, vector<8x48xf32>
    %c0_1 = arith.constant 0 : index
    %c0_2 = arith.constant 0 : index
    %1 = vector.load %arg2[%c0_1, %c0_2] : memref<8x32xf32, #tpu.memory_space<vmem>>, vector<8x32xf32>
    %c0_3 = arith.constant 0 : index
    %c0_4 = arith.constant 0 : index
    %2 = vector.load %arg3[%c0_3, %c0_4] : memref<48x4xf32, #tpu.memory_space<vmem>>, vector<48x4xf32>
    %cst = arith.constant dense<0.000000e+00> : vector<8x4xf32>
    %3 = tpu.matmul %0, %2, %cst {dimension_numbers = #tpu.dot_dimension_numbers<[1], [0], [0], [1], [0, 0, 1, 1], [], []>} : vector<8x48xf32>, vector<48x4xf32>, vector<8x4xf32> -> vector<8x4xf32>
    %c0_5 = arith.constant 0 : index
    %c0_6 = arith.constant 0 : index
    %4 = vector.load %arg5[%c0_5, %c0_6] : memref<1x4xf32, #tpu.memory_space<vmem>>, vector<1x4xf32>
    %5 = vector.broadcast %4 : vector<1x4xf32> to vector<8x4xf32>
    %6 = arith.addf %3, %5 : vector<8x4xf32>
    %cst_7 = arith.constant dense<0xFF800000> : vector<8xf32>
    %7 = vector.multi_reduction <maximumf>, %6, %cst_7 [1] : vector<8x4xf32> to vector<8xf32>
    %8 = vector.shape_cast %7 : vector<8xf32> to vector<8x1xf32>
    %9 = vector.broadcast %8 : vector<8x1xf32> to vector<8x4xf32>
    %10 = arith.subf %6, %9 : vector<8x4xf32>
    %11 = math.exp %10 : vector<8x4xf32>
    %cst_8 = arith.constant dense<0.000000e+00> : vector<8xf32>
    %12 = vector.multi_reduction <add>, %11, %cst_8 [1] : vector<8x4xf32> to vector<8xf32>
    %13 = vector.shape_cast %12 : vector<8xf32> to vector<8x1xf32>
    %14 = vector.broadcast %13 : vector<8x1xf32> to vector<8x4xf32>
    %15 = arith.divf %11, %14 : vector<8x4xf32>
    %16 = tpu.iota {dimensions = array<i32: 1>} : vector<8x4xi32>
    %cst_9 = arith.constant dense<0xFF800000> : vector<8xf32>
    %17 = vector.multi_reduction <maximumf>, %15, %cst_9 [1] : vector<8x4xf32> to vector<8xf32>
    %18 = vector.shape_cast %17 : vector<8xf32> to vector<8x1xf32>
    %19 = vector.broadcast %18 : vector<8x1xf32> to vector<8x4xf32>
    %20 = arith.cmpf oge, %15, %19 : vector<8x4xf32>
    %c4_i32 = arith.constant 4 : i32
    %21 = vector.broadcast %c4_i32 : i32 to vector<8x4xi32>
    %22 = arith.select %20, %16, %21 : vector<8x4xi1>, vector<8x4xi32>
    %cst_10 = arith.constant dense<2147483647> : vector<8xi32>
    %23 = vector.multi_reduction <minsi>, %22, %cst_10 [1] : vector<8x4xi32> to vector<8xi32>
    %24 = vector.shape_cast %23 : vector<8xi32> to vector<8x1xi32>
    %25 = vector.broadcast %24 : vector<8x1xi32> to vector<8x4xi32>
    %26 = arith.cmpi eq, %16, %25 : vector<8x4xi32>
    %27 = arith.extui %26 : vector<8x4xi1> to vector<8x4xi32>
    %28 = arith.sitofp %27 : vector<8x4xi32> to vector<8x4xf32>
    %29 = arith.truncf %0 : vector<8x48xf32> to vector<8x48xbf16>
    %c0_11 = arith.constant 0 : index
    %c0_12 = arith.constant 0 : index
    %30 = vector.load %arg4[%c0_11, %c0_12] : memref<48x512xbf16, #tpu.memory_space<vmem>>, vector<48x512xbf16>
    %cst_13 = arith.constant dense<0.000000e+00> : vector<8x512xf32>
    %31 = tpu.matmul %29, %30, %cst_13 {dimension_numbers = #tpu.dot_dimension_numbers<[1], [0], [0], [1], [0, 0, 1, 1], [], []>} : vector<8x48xbf16>, vector<48x512xbf16>, vector<8x512xf32> -> vector<8x512xf32>
    %c0_14 = arith.constant 0 : index
    %c0_15 = arith.constant 0 : index
    %32 = vector.load %arg6[%c0_14, %c0_15] : memref<1x512xf32, #tpu.memory_space<vmem>>, vector<1x512xf32>
    %33 = vector.broadcast %32 : vector<1x512xf32> to vector<8x512xf32>
    %34 = arith.addf %31, %33 : vector<8x512xf32>
    %35 = vector.extract_strided_slice %34 {offsets = [0, 0], sizes = [8, 128], strides = [1, 1]} : vector<8x512xf32> to vector<8x128xf32>
    %36 = vector.extract_strided_slice %34 {offsets = [0, 128], sizes = [8, 128], strides = [1, 1]} : vector<8x512xf32> to vector<8x128xf32>
    %37 = vector.extract_strided_slice %34 {offsets = [0, 256], sizes = [8, 128], strides = [1, 1]} : vector<8x512xf32> to vector<8x128xf32>
    %38 = vector.extract_strided_slice %34 {offsets = [0, 384], sizes = [8, 128], strides = [1, 1]} : vector<8x512xf32> to vector<8x128xf32>
    %39 = tpu.concatenate %1, %1, %1, %1 in 1 : vector<8x32xf32>, vector<8x32xf32>, vector<8x32xf32>, vector<8x32xf32> -> vector<8x128xf32>
    %40 = arith.negf %37 : vector<8x128xf32>
    %41 = math.exp %40 : vector<8x128xf32>
    %cst_16 = arith.constant 1.000000e+00 : f32
    %42 = vector.broadcast %cst_16 : f32 to vector<8x128xf32>
    %43 = arith.addf %42, %41 : vector<8x128xf32>
    %44 = arith.divf %42, %43 : vector<8x128xf32>
    %45 = arith.mulf %44, %39 : vector<8x128xf32>
    %46 = arith.negf %35 : vector<8x128xf32>
    %47 = math.exp %46 : vector<8x128xf32>
    %cst_17 = arith.constant 1.000000e+00 : f32
    %48 = vector.broadcast %cst_17 : f32 to vector<8x128xf32>
    %49 = arith.addf %48, %47 : vector<8x128xf32>
    %50 = arith.divf %48, %49 : vector<8x128xf32>
    %51 = math.tanh %36 : vector<8x128xf32>
    %52 = arith.mulf %50, %51 : vector<8x128xf32>
    %53 = arith.addf %45, %52 : vector<8x128xf32>
    %54 = arith.negf %38 : vector<8x128xf32>
    %55 = math.exp %54 : vector<8x128xf32>
    %cst_18 = arith.constant 1.000000e+00 : f32
    %56 = vector.broadcast %cst_18 : f32 to vector<8x128xf32>
    %57 = arith.addf %56, %55 : vector<8x128xf32>
    %58 = arith.divf %56, %57 : vector<8x128xf32>
    %59 = math.tanh %53 : vector<8x128xf32>
    %60 = arith.mulf %58, %59 : vector<8x128xf32>
    %c0_19 = arith.constant 0 : index
    %c0_20 = arith.constant 0 : index
    %61 = vector.load %arg7[%c0_19, %c0_20] : memref<4x128xf32, #tpu.memory_space<vmem>>, vector<4x128xf32>
    %cst_21 = arith.constant dense<0.000000e+00> : vector<8x128xf32>
    %62 = tpu.matmul %28, %61, %cst_21 {dimension_numbers = #tpu.dot_dimension_numbers<[1], [0], [0], [1], [0, 0, 1, 1], [], []>} : vector<8x4xf32>, vector<4x128xf32>, vector<8x128xf32> -> vector<8x128xf32>
    %63 = arith.mulf %60, %62 : vector<8x128xf32>
    %c0_22 = arith.constant 0 : index
    %c0_23 = arith.constant 0 : index
    %64 = vector.load %arg8[%c0_22, %c0_23] : memref<128x32xf32, #tpu.memory_space<vmem>>, vector<128x32xf32>
    %cst_24 = arith.constant dense<0.000000e+00> : vector<8x32xf32>
    %65 = tpu.matmul %63, %64, %cst_24 {dimension_numbers = #tpu.dot_dimension_numbers<[1], [0], [0], [1], [0, 0, 1, 1], [], []>} : vector<8x128xf32>, vector<128x32xf32>, vector<8x32xf32> -> vector<8x32xf32>
    %66 = arith.mulf %53, %62 : vector<8x128xf32>
    %c0_25 = arith.constant 0 : index
    %c0_26 = arith.constant 0 : index
    %67 = vector.load %arg8[%c0_25, %c0_26] : memref<128x32xf32, #tpu.memory_space<vmem>>, vector<128x32xf32>
    %cst_27 = arith.constant dense<0.000000e+00> : vector<8x32xf32>
    %68 = tpu.matmul %66, %67, %cst_27 {dimension_numbers = #tpu.dot_dimension_numbers<[1], [0], [0], [1], [0, 0, 1, 1], [], []>} : vector<8x128xf32>, vector<128x32xf32>, vector<8x32xf32> -> vector<8x32xf32>
    %cst_28 = arith.constant 0.000000e+00 : f32
    %69 = vector.broadcast %cst_28 : f32 to vector<8x128xf32>
    %c0_29 = arith.constant 0 : index
    %c0_30 = arith.constant 0 : index
    %70 = vector.load %arg9[%c0_29, %c0_30] : memref<8x128xf32, #tpu.memory_space<vmem>>, vector<8x128xf32>
    tpu.vector_store %arg9[%c0_29, %c0_30], %69 {strides = array<i32>} : memref<8x128xf32, #tpu.memory_space<vmem>>, vector<8x128xf32>,
    %c0_31 = arith.constant 0 : index
    %c0_32 = arith.constant 0 : index
    %71 = vector.load %arg9[%c0_31, %c0_32] : memref<8x128xf32, #tpu.memory_space<vmem>>, vector<8x4xf32>
    tpu.vector_store %arg9[%c0_31, %c0_32], %28 {strides = array<i32>} : memref<8x128xf32, #tpu.memory_space<vmem>>, vector<8x4xf32>,
    %c0_33 = arith.constant 0 : index
    %c4 = arith.constant 4 : index
    %72 = vector.load %arg9[%c0_33, %c4] : memref<8x128xf32, #tpu.memory_space<vmem>>, vector<8x4xf32>
    tpu.vector_store %arg9[%c0_33, %c4], %15 {strides = array<i32>} : memref<8x128xf32, #tpu.memory_space<vmem>>, vector<8x4xf32>,
    %c0_34 = arith.constant 0 : index
    %c8 = arith.constant 8 : index
    %73 = vector.load %arg9[%c0_34, %c8] : memref<8x128xf32, #tpu.memory_space<vmem>>, vector<8x32xf32>
    tpu.vector_store %arg9[%c0_34, %c8], %65 {strides = array<i32>} : memref<8x128xf32, #tpu.memory_space<vmem>>, vector<8x32xf32>,
    %c0_35 = arith.constant 0 : index
    %c40 = arith.constant 40 : index
    %74 = vector.load %arg9[%c0_35, %c40] : memref<8x128xf32, #tpu.memory_space<vmem>>, vector<8x32xf32>
    tpu.vector_store %arg9[%c0_35, %c40], %68 {strides = array<i32>} : memref<8x128xf32, #tpu.memory_space<vmem>>, vector<8x32xf32>,
    return
  }
  func.func @transform_0(%arg0: i32) -> (i32, i32) {
    %c0_i32 = arith.constant 0 : i32
    %c0_i32_0 = arith.constant 0 : i32
    return %arg0, %c0_i32 : i32, i32
  }
  func.func @transform_1(%arg0: i32) -> (i32, i32) {
    %c0_i32 = arith.constant 0 : i32
    %c0_i32_0 = arith.constant 0 : i32
    return %arg0, %c0_i32 : i32, i32
  }
  func.func @transform_2(%arg0: i32) -> (i32, i32) {
    %c0_i32 = arith.constant 0 : i32
    %c0_i32_0 = arith.constant 0 : i32
    %c0_i32_1 = arith.constant 0 : i32
    return %c0_i32, %c0_i32_0 : i32, i32
  }
  func.func @transform_3(%arg0: i32) -> (i32, i32) {
    %c0_i32 = arith.constant 0 : i32
    %c0_i32_0 = arith.constant 0 : i32
    %c0_i32_1 = arith.constant 0 : i32
    return %c0_i32, %c0_i32_0 : i32, i32
  }
  func.func @transform_4(%arg0: i32) -> (i32, i32) {
    %c0_i32 = arith.constant 0 : i32
    %c0_i32_0 = arith.constant 0 : i32
    %c0_i32_1 = arith.constant 0 : i32
    return %c0_i32, %c0_i32_0 : i32, i32
  }
  func.func @transform_5(%arg0: i32) -> (i32, i32) {
    %c0_i32 = arith.constant 0 : i32
    %c0_i32_0 = arith.constant 0 : i32
    %c0_i32_1 = arith.constant 0 : i32
    return %c0_i32, %c0_i32_0 : i32, i32
  }
  func.func @transform_6(%arg0: i32) -> (i32, i32) {
    %c0_i32 = arith.constant 0 : i32
    %c0_i32_0 = arith.constant 0 : i32
    %c0_i32_1 = arith.constant 0 : i32
    return %c0_i32, %c0_i32_0 : i32, i32
  }
  func.func @transform_7(%arg0: i32) -> (i32, i32) {
    %c0_i32 = arith.constant 0 : i32
    %c0_i32_0 = arith.constant 0 : i32
    %c0_i32_1 = arith.constant 0 : i32
    return %c0_i32, %c0_i32_0 : i32, i32
  }
  func.func @transform_8(%arg0: i32) -> (i32, i32) {
    %c0_i32 = arith.constant 0 : i32
    %c0_i32_0 = arith.constant 0 : i32
    return %arg0, %c0_i32 : i32, i32
  }
}

</mosaic_0001>

<bundles_post_ra>
// kernel: tpu_custom_call.1
= control target key start
LH: loop header
LB: loop body
LE: loop exit
PB: predicated region body
PF: predicated region fallthrough
CT: control target
= control target key end

     0   :  { %v932_v3 = vmov 0.0|0.0   ;;  %vm933_vm0 = vmmov 0   ;;  %v934_v6 = vmov 0.0   ;;  %s1205_s0 = inlined_call_operand.vmem [shape: f32[8,48], index: 0, kind: input, shape index: {}]   ;;  %s1206_s1 = inlined_call_operand.vmem [shape: f32[8,32], index: 1, kind: input, shape index: {}]   ;;  %s1207_s2 = inlined_call_operand.vmem [shape: f32[48,4], index: 2, kind: input, shape index: {}]   ;;  %s1208_s3 = inlined_call_operand.vmem [shape: bf16[48,512], index: 3, kind: input, shape index: {}]   ;;  %s1209_s4 = inlined_call_operand.vmem [shape: f32[1,4], index: 4, kind: input, shape index: {}]   ;;  %s1210_s5 = inlined_call_operand.vmem [shape: f32[1,512], index: 5, kind: input, shape index: {}]   ;;  %s1211_s6 = inlined_call_operand.vmem [shape: f32[4,128], index: 6, kind: input, shape index: {}]   ;;  %s1212_s7 = inlined_call_operand.vmem [shape: f32[128,32], index: 7, kind: input, shape index: {}]   ;;  %s1213_s8 = inlined_call_operand.hbm [shape: f32[8,128], index: 8, kind: output, shape index: {}]  }
   0x1   :  { %v33_v0 = vld [vmem:[%s1207_s2] sm:$0xff]  ;;  %v34_v1 = vld [vmem:[%s1207_s2 + $0x8] sm:$0xff]  ;;  %v35_v2 = vld [vmem:[%s1207_s2 + $0x10] sm:$0xff]  ;;  %802 = vmatprep.subr.bf16.mxu0 %v932_v3  ;;  %724 = vmatprep.mubr.msk.f32.mxu0 %vm933_vm0, %v934_v6  ;;  %613 = vst [vmem:[#allocation2] sm:$0xff] %v934_v6 }
   0x2   :  { %v803_v4 = vpack.c.bf16 %v34_v1, %v33_v0  ;;  %v36_v5 = vld [vmem:[%s1207_s2 + $0x18] sm:$0xff]  ;;  %v37_v7 = vld [vmem:[%s1207_s2 + $0x20] sm:$0xff]  ;;  %v38_v8 = vld [vmem:[%s1207_s2 + $0x28] sm:$0xff] }
   0x3   :  { %v806_v9 = vpack.c.bf16 %v36_v5, %v35_v2 }
   0x4   :  { %804 = vmatpush3.bf16.msra.mxu0 %v803_v4 }
   0x5   :  { %805 = vmatprep.subr.bf16.mxu0 %v932_v3 }
   0x6   :  { %13 = vsyncpa [#allocation3], 0  ;;  %v809_v10 = vpack.c.bf16 %v38_v8, %v37_v7  ;;  %v1015_v11 = vld [vmem:[%s1205_s0] sm:$0xff]  ;;  %vm46_vm1 = vcmask 392192   ;;  %vm120_vm2 = vcmask 31744   ;;  %v132_v26 = vlaneseq  ;;  %s935_s20 = smov 32  }
   0x7   :  { %v647_v12 = vld [vmem:[%s1209_s4] ss:$0 sm:$0xff]  ;;  %s936_s21 = smov 96   ;;  %s937_s22 = smov 4   ;;  %v870_v34 = vld [vmem:[%s1208_s3 + $0x4] ss:$16 sps:$4 sm:$0xff]   ;;  %v157_v47 = vpack.c.bf16 %v1015_v11, %v1015_v11 }
   0x8   :  { %807 = vmatpush3.bf16.msra.mxu0 %v806_v9  ;;  %v1026_v27 = vand.u32 127, %v132_v26  ;;  %v1033_v33 = vld [vmem:[%s1206_s1] sm:$0xff]  ;;  %v872_v35 = vld [vmem:[%s1208_s3 + $0x8] ss:$16 sps:$4 sm:$0xff]   ;;  %v874_v36 = vld [vmem:[%s1208_s3 + $0xc] ss:$16 sps:$4 sm:$0xff]   ;;  %255 = vmatprep.subr.bf16.mxu1 %v870_v34 }
   0x9   :  { %808 = vmatprep.subr.bf16.mxu0 %v932_v3  ;;  %v875_v37 = vld [vmem:[%s1208_s3] ss:$16 sps:$4 sm:$0xff]   ;;  %v876_v38 = vld [vmem:[%s1208_s3 + $0x24] ss:$16 sps:$4 sm:$0xff]   ;;  %v880_v39 = vld [vmem:[%s1208_s3 + $0x2c] ss:$16 sps:$4 sm:$0xff]  }
   0xa   :  { %256 = vmatpush1.bf16.msra.mxu1 %v875_v37  ;;  %v878_v40 = vld [vmem:[%s1208_s3 + $0x28] ss:$16 sps:$4 sm:$0xff]   ;;  %v881_v41 = vld [vmem:[%s1208_s3 + $0x20] ss:$16 sps:$4 sm:$0xff]   ;;  %v882_v42 = vld [vmem:[%s1208_s3 + $0x44] ss:$16 sps:$4 sm:$0xff]  }
   0xb   :  { %257 = vmatprep.subr.bf16.mxu1 %v876_v38  ;;  %v886_v43 = vld [vmem:[%s1208_s3 + $0x4c] ss:$16 sps:$4 sm:$0xff]   ;;  %v938_v44 = vmov 0   ;;  %v884_v45 = vld [vmem:[%s1208_s3 + $0x48] ss:$16 sps:$4 sm:$0xff]   ;;  %vm381_vm4 = vcmask 1043456  }
   0xc   :  { %810 = vmatpush3.bf16.msra.mxu0 %v809_v10  ;;  %287 = vmatprep.mubr.bf16.mxu1 %v938_v44  ;;  %v887_v46 = vld [vmem:[%s1208_s3 + $0x40] ss:$16 sps:$4 sm:$0xff]   ;;  %v457_v54 = vld [vmem:[%s1212_s7 + $0x8] sm:$0xff]  ;;  %s939_s25 = smov 64   ;;  %v459_v57 = vld [vmem:[%s1212_s7 + $0x18] sm:$0xff]  ;;  %vm347_vm6 = vcmask 261120  }
   0xd   :  { %296 = vmatprep.subr.bf16.mxu0 %v874_v36  ;;  %v377_v48 = vld [vmem:[%s1211_s6] sm:$0xf]  ;;  %v458_v56 = vld [vmem:[%s1212_s7 + $0x10] sm:$0xff]  ;;  %v461_v60 = vld [vmem:[%s1212_s7 + $0x28] sm:$0xff]  ;;  %vm349_vm7 = vcmask 523264   ;;  %vm351_vm8 = vcmask 785408  }
   0xe   :  { %258 = vmatpush1.bf16.msra.mxu1 %v881_v41  ;;  %v456_v53 = vld [vmem:[%s1212_s7] sm:$0xff]  ;;  %v1106_v58 = vpack.c.bf16 %v459_v57, %v458_v56  ;;  %v462_v62 = vld [vmem:[%s1212_s7 + $0x30] sm:$0xff]  ;;  %v463_v63 = vld [vmem:[%s1212_s7 + $0x38] sm:$0xff]  ;;  %vm619_vm10 = vcmask 64544   ;;  %s940_s27 = smov 40   ;;  %s941_s28 = smov 8  }
   0xf   :  { %725 = vmatmul.mubr.msk.f32.vlgmr.msra.gmra.mrb[0].mxu0 %vm46_vm1, %v1015_v11  ;;  %259 = vmatprep.subr.bf16.mxu1 %v882_v42  ;;  %v1097_v55 = vpack.c.bf16 %v457_v54, %v456_v53  ;;  %v460_v59 = vld [vmem:[%s1212_s7 + $0x20] sm:$0xff]  ;;  %v1126_v0 = vpack.c.bf16 %v463_v63, %v462_v62  ;;  %v465_v2 = vld [vmem:[%s1212_s7 + $0x48] sm:$0xff]  ;;  %v466_v5 = vld [vmem:[%s1212_s7 + $0x50] sm:$0xff]  ;;  %s942_s1 = smov [#allocation2]   ;;  %vm625_vm11 = vcmask 326720   ;;  %vm631_vm12 = vcmask 589120  }
  0x10   :  { %297 = vmatpush1.bf16.msra.mxu0 %v872_v35  ;;  %328 = vmatprep.mubr.bf16.mxu0 %v938_v44  ;;  %v1116_v61 = vpack.c.bf16 %v461_v60, %v460_v59  ;;  %v464_v1 = vld [vmem:[%s1212_s7 + $0x40] sm:$0xff]  ;;  %v467_v7 = vld [vmem:[%s1212_s7 + $0x58] sm:$0xff]  ;;  %v469_v10 = vld [vmem:[%s1212_s7 + $0x68] sm:$0xff]  ;;  %s639_s29 = sshll.u32 %s942_s1, 4  ;;  %s640_s29 = int_to_ptr.vmem [resolvable:$true] %s639_s29 }
  0x11   :  { %298 = vmatprep.subr.bf16.mxu0 %v880_v39  ;;  %v1136_v4 = vpack.c.bf16 %v465_v2, %v464_v1  ;;  %v1146_v8 = vpack.c.bf16 %v467_v7, %v466_v5  ;;  %v468_v9 = vld [vmem:[%s1212_s7 + $0x60] sm:$0xff]  ;;  %p913_p1 = scmp.lt.s32.totalorder %s640_s29, %s640_s29 }
  0x12   :  { %260 = vmatpush1.bf16.msra.mxu1 %v887_v46  ;;  %v1156_v11 = vpack.c.bf16 %v469_v10, %v468_v9 }
  0x13   :  { %727 = vmatprep.subr.mxu1 %v934_v6 }
  0x14   :  { %299 = vmatpush1.bf16.msra.mxu0 %v878_v40 }
  0x15   :  { %300 = vmatprep.subr.bf16.mxu0 %v886_v43  ;;  %662 = vmatmul.mubr.msk.bf16.vlgmr.msra.gmra.mrb[0].mxu1 %vm46_vm1, %v157_v47 }
  0x16   :  { %728 = vmatpush3.msk.msra.mxu1 %vm381_vm4, %v377_v48  ;;  %729 = vmatprep.mubr.msk.f32.mxu1 %vm933_vm0, %v934_v6 }
  0x17   :  { %811 = vmatprep.subr.bf16.mxu1 %v932_v3 }
  0x18   :  { %301 = vmatpush1.bf16.msra.mxu0 %v884_v45 }
  0x19   :  { %835 = vmatprep.subr.bf16.mxu0 %v932_v3 }
  0x1b   :  { %663 = vmatmul.mubr.msk.bf16.vlgmr.msra.gmra.mrb[4].mxu0 %vm46_vm1, %v157_v47 }
  0x1c   :  { %799 = vmatprep.mubr.msk.f32.mxu0 %vm933_vm0, %v934_v6  ;;  %837 = vmatpush3.bf16.msra.mxu0 %v1097_v55 }
  0x1d   :  { %838 = vmatprep.subr.bf16.mxu0 %v932_v3 }
  0x20   :  { %840 = vmatpush3.bf16.msra.mxu0 %v1106_v58 }
  0x21   :  { %841 = vmatprep.subr.bf16.mxu0 %v932_v3 }
  0x24   :  { %843 = vmatpush3.bf16.msra.mxu0 %v1116_v61 }
  0x25   :  { %844 = vmatprep.subr.bf16.mxu0 %v932_v3 }
  0x28   :  { %846 = vmatpush3.bf16.msra.mxu0 %v1126_v0 }
  0x29   :  { %847 = vmatprep.subr.bf16.mxu0 %v932_v3 }
  0x2c   :  { %849 = vmatpush3.bf16.msra.mxu0 %v1136_v4 }
  0x2d   :  { %850 = vmatprep.subr.bf16.mxu0 %v932_v3 }
  0x30   :  { %852 = vmatpush3.bf16.msra.mxu0 %v1146_v8 }
  0x31   :  { %853 = vmatprep.subr.bf16.mxu0 %v932_v3 }
  0x34   :  { %855 = vmatpush3.bf16.msra.mxu0 %v1156_v11 }
  0x35   :  { %856 = vmatprep.subr.bf16.mxu0 %v932_v3 }
  0xe2   :  { %v116_v13 = vpop.f32.mrb[0].mxu0 }
  0xe3   :  { %v117_v14 = vadd.f32 %v647_v12, %v116_v13  ;;  %v726_v15 = vpop.f32.mrb[1].mxu0  ;;  %v173_v12 = vshrl.u32 %v132_v26, 7 }
  0xe4   :  { %v170_v15 = vld [vmem:[%s1210_s5] sm:$0xf] }
  0xe5   :  { %v121_v16 = vsel %vm120_vm2, %v117_v14, -inf  ;;  %v174_v13 = vsub.s32 0, %v173_v12 }
  0xe6   :  { %122 = vmax.xlane.f32.xlu0 %v121_v16  ;;  %v178_v16 = vsub.s32 1, %v173_v12 }
 0x173   :  { %v123_v17 = vpop.xlane.xlu0 %122 }
 0x174   :  { %v124_v18 = vsub.f32 %v117_v14, %v123_v17  ;;  %v182_v14 = vsub.s32 2, %v173_v12  ;;  %v186_v17 = vsub.s32 3, %v173_v12 }
 0x176   :  { %v125_v19 = vmul.f32 1.442695, %v124_v18  ;;  %v175_v18 = vrot.slane %v170_v15, %v174_v13 }
 0x178   :  { %888 = vpow2.f32 %v125_v19  ;;  %v183_v19 = vrot.slane %v170_v15, %v182_v14 }
 0x182   :  { %v889_v20 = vpop.eup %888 }
 0x183   :  { %v127_v21 = vsel %vm120_vm2, %v889_v20, 0.0 }
 0x184   :  { %128 = vadd.xlane.f32.xlu0 %v127_v21  ;;  %v187_v21 = vrot.slane %v170_v15, %v186_v17 }
 0x211   :  { %v129_v22 = vpop.xlane.xlu0 %128 }
 0x212   :  { %890 = vrcp.f32 %v129_v22  ;;  %v289_v22 = vpop.f32.mrb[0].mxu1 }
 0x21c   :  { %v891_v23 = vpop.eup %890 }
 0x21d   :  { %v131_v24 = vmul.f32 %v891_v23, %v889_v20  ;;  %v179_v20 = vrot.slane %v170_v15, %v178_v16  ;;  %v330_v23 = vpop.f32.mrb[4].mxu0 }
 0x21f   :  { %v134_v25 = vsel %vm120_vm2, %v131_v24, -inf }
 0x220   :  { %135 = vmax.xlane.f32.xlu1 %v134_v25  ;;  %v331_v25 = vadd.f32 %v330_v23, %v183_v19 }
 0x222   :  { %v664_v37 = vmul.f32 -1.442695, %v331_v25 }
 0x2ad   :  { %v136_v28 = vpop.xlane.xlu1 %135 }
 0x2ae   :  { %vm137_vm3 = vcmp.ge.f32.partialorder %v131_v24, %v136_v28  ;;  %v291_v28 = vpop.f32.mrb[1].mxu1 }
 0x2af   :  { %v138_v29 = vsel %vm137_vm3, %v1026_v27, 4 }
 0x2b0   :  { %v139_v30 = vsel %vm120_vm2, %v138_v29, 2147483647  ;;  %v332_v29 = vpop.f32.mrb[5].mxu0 }
 0x2b1   :  { %v141_v31 = vshra.s32 %v139_v30, 16  ;;  %v140_v49 = vand.u32 65535, %v139_v30  ;;  %v292_v30 = vadd.f32 %v291_v28, %v179_v20  ;;  %v333_v26 = vadd.f32 %v332_v29, %v187_v21 }
 0x2b3   :  { %v143_v32 = vcvt.s32.f32 %v141_v31  ;;  %v142_v51 = vcvt.s32.f32 %v140_v49  ;;  %v293_v31 = vpop.f32.mrb[2].mxu1  ;;  %v666_v41 = vmul.f32 -1.442695, %v333_v26 }
 0x2b4   :  { %v294_v35 = vpop.f32.mrb[3].mxu1 }
 0x2b5   :  { %144 = vmin.xlane.f32.xlu1 %v143_v32 }
 0x2c6   :  { %338 = vrot.lane.b32.xlu1 %v1033_v33, %s935_s20 }
 0x2ca   :  { %344 = vrot.lane.b32.xlu1 %v1033_v33, %s936_s21 }
 0x2ce   :  { %616 = vrot.lane.b32.xlu1 %v131_v24, %s937_s22  ;;  %v290_v24 = vadd.f32 %v289_v22, %v175_v18 }
 0x2d0   :  { %v665_v34 = vmul.f32 -1.442695, %v290_v24 }
 0x2d2   :  { %892 = vpow2.f32 %v665_v34 }
 0x2d3   :  { %894 = vpow2.f32 %v664_v37 }
 0x2d4   :  { %896 = vtanh.f32 %v292_v30 }
 0x2dc   :  { %v893_v38 = vpop.eup %892 }
 0x2dd   :  { %v363_v39 = vadd.f32 1.0, %v893_v38  ;;  %v895_v40 = vpop.eup %894 }
 0x2de   :  { %v356_v42 = vadd.f32 1.0, %v895_v40  ;;  %v897_v43 = vpop.eup %896 }
 0x2df   :  { %898 = vrcp.f32 %v363_v39 }
 0x2e0   :  { %900 = vpow2.f32 %v666_v41 }
 0x2e1   :  { %902 = vrcp.f32 %v356_v42 }
 0x2e9   :  { %v899_v44 = vpop.eup %898 }
 0x2ea   :  { %v367_v45 = vmul.f32 %v899_v44, %v897_v43  ;;  %v901_v53 = vpop.eup %900 }
 0x2eb   :  { %v903_v57 = vpop.eup %902  ;;  %v372_v60 = vadd.f32 1.0, %v901_v53 }
 0x2ed   :  { %904 = vrcp.f32 %v372_v60 }
 0x342   :  { %v1087_v50 = vpop.xlane.xlu1 %144 }
 0x343   :  { %vm146_vm5 = vcmp.eq.f32.partialorder %v143_v32, %v1087_v50  ;;  %v334_v32 = vpop.f32.mrb[6].mxu0  ;;  %v151_v47 = vcvt.f32.s32 %v1087_v50 }
 0x344   :  { %v147_v52 = vsel %vm146_vm5, %v142_v51, inf  ;;  %v335_v36 = vpop.f32.mrb[7].mxu0 }
 0x345   :  { %148 = vmin.xlane.f32.xlu0 %v147_v52  ;;  %v152_v49 = vshll.u32 %v151_v47, 16 }
 0x346   :  { %v339_v46 = vpop.permute.xlu1 %338 }
 0x347   :  { %v348_v54 = vsel %vm347_vm6, %v1033_v33, %v339_v46 }
 0x34a   :  { %v345_v51 = vpop.permute.xlu1 %344 }
 0x34e   :  { %v617_v1 = vpop.permute.xlu1 %616 }
 0x35b   :  { %341 = vrot.lane.b32.xlu0 %v1033_v33, %s939_s25  ;;  %v905_v33 = vpop.eup %904 }
 0x3d2   :  { %v149_v48 = vpop.xlane.xlu0 %148 }
 0x3d3   :  { %v150_v52 = vcvt.f32.s32 %v149_v48 }
 0x3d5   :  { %v153_v56 = vadd.s32 %v152_v49, %v150_v52 }
 0x3d6   :  { %v342_v59 = vpop.permute.xlu0 %341 }
 0x3d7   :  { %vm154_vm9 = vcmp.eq.s32.totalorder %v1026_v27, %v153_v56  ;;  %v350_v62 = vsel %vm349_vm7, %v348_v54, %v342_v59 }
 0x3d8   :  { %v649_v50 = vsel %vm154_vm9, 1.0, %v934_v6  ;;  %v352_v63 = vsel %vm351_vm8, %v350_v62, %v345_v51 }
 0x3d9   :  { %614 = vst.msk [vmem:[#allocation2] sm:$0xff] %vm120_vm2, %v649_v50  ;;  %730 = vmatmul.mubr.msk.f32.vlgmr.msra.gmra.mrb[4].mxu1 %vm120_vm2, %v649_v50  ;;  %v359_v2 = vmul.f32 %v903_v57, %v352_v63 }
 0x3da   :  { %813 = vmatpush3.bf16.msra.mxu1 %v1097_v55  ;;  %764 = vmatprep.mubr.msk.f32.mxu1 %vm933_vm0, %v934_v6  ;;  %620 = vst.msk [vmem:[#allocation2] sm:$0xff] %vm619_vm10, %v617_v1 }
 0x3db   :  { %814 = vmatprep.subr.bf16.mxu1 %v932_v3  ;;  %v368_v27 = vadd.f32 %v367_v45, %v359_v2 }
 0x3dd   :  { %906 = vtanh.f32 %v368_v27 }
 0x3de   :  { %816 = vmatpush3.bf16.msra.mxu1 %v1106_v58  ;;  %v470_v58 = vld [vmem:[%s1212_s7 + $0x70] sm:$0xff] }
 0x3df   :  { %817 = vmatprep.subr.bf16.mxu1 %v932_v3 }
 0x3e2   :  { %819 = vmatpush3.bf16.msra.mxu1 %v1116_v61  ;;  %v471_v61 = vld [vmem:[%s1212_s7 + $0x78] sm:$0xff]  ;;  %s908_s7 = scalar_lea.vmem %s640_s29, 128 }
 0x3e3   :  { %820 = vmatprep.subr.bf16.mxu1 %v932_v3  ;;  %p909_p0 = scmp.ne.s32.totalorder %s640_s29, %s908_s7  ;;  %p914_p2 = scmp.lt.s32.totalorder %s908_s7, %s908_s7 }
 0x3e5   :  { %p915_p3 = por %p914_p2, %p913_p1 }
 0x3e6   :  { %822 = vmatpush3.bf16.msra.mxu1 %v1126_v0  ;;  %v833_v0 = vpack.c.bf16 %v471_v61, %v470_v58 }
 0x3e7   :  { %v907_v55 = vpop.eup %906  ;;  %823 = vmatprep.subr.bf16.mxu1 %v932_v3  ;;  %p916_p4 = pnand %p915_p3, %p909_p0 }
 0x3e8   :  { %v376_v6 = vmul.f32 %v907_v55, %v905_v33  ;;  %858 = vmatpush3.bf16.msra.mxu0 %v833_v0 }
 0x3ea   :  { %825 = vmatpush3.bf16.msra.mxu1 %v1136_v4 }
 0x3eb   :  { %826 = vmatprep.subr.bf16.mxu1 %v932_v3 }
 0x3ee   :  { %828 = vmatpush3.bf16.msra.mxu1 %v1146_v8 }
 0x3ef   :  { %829 = vmatprep.subr.bf16.mxu1 %v932_v3 }
 0x3f2   :  { %831 = vmatpush3.bf16.msra.mxu1 %v1156_v11 }
 0x3f3   :  { %832 = vmatprep.subr.bf16.mxu1 %v932_v3 }
 0x3f6   :  { %834 = vmatpush3.bf16.msra.mxu1 %v833_v0 }
 0x4ac   :  { %v451_v4 = vpop.f32.mrb[4].mxu1 }
 0x4ad   :  { %v455_v5 = vmul.f32 %v451_v4, %v376_v6  ;;  %v542_v7 = vmul.f32 %v451_v4, %v368_v27  ;;  %v731_v8 = vpop.f32.mrb[5].mxu1 }
 0x4af   :  { %765 = vmatmul.mubr.f32.vlgmr.msra.gmra.mrb[6].mxu1 %v455_v5  ;;  %800 = vmatmul.mubr.f32.vlgmr.msra.gmra.mrb[2].mxu0 %v542_v7 }
 0x582   :  { %v538_v9 = vpop.f32.mrb[6].mxu1  ;;  %v609_v10 = vpop.f32.mrb[2].mxu0 }
 0x583   :  { %628 = vrot.lane.b32.xlu0 %v609_v10, %s940_s27  ;;  %v801_v3 = vpop.f32.mrb[3].mxu0  ;;  %622 = vrot.lane.b32.xlu1 %v538_v9, %s941_s28  ;;  %v766_v11 = vpop.f32.mrb[7].mxu1 }
 0x5f5   :  { %v629_v12 = vpop.permute.xlu0 %628  ;;  %v623_v13 = vpop.permute.xlu1 %622 }
 0x5f6   :  { %626 = vst.msk [vmem:[#allocation2] sm:$0xff] %vm625_vm11, %v623_v13 }
 0x5f7   :  { %632 = vst.msk [vmem:[#allocation2] sm:$0xff] %vm631_vm12, %v629_v12 }
 0x5f8   :  { %919 = shalt.err (!%p916_p4)
}
 0x5f9   :  { %s920_s10 = scalar_lea.hbm %s1213_s8, 128 }
 0x5fa   :  { %p921_p5 = scmp.ne.s32.totalorder %s1213_s8, %s920_s10  ;;  %p924_p6 = scmp.lt.u32.totalorder %s920_s10, %s1213_s8 }
 0x5fc   :  { %p926_p7 = pnand %p924_p6, %p921_p5 }
 0x5fe   :  { %929 = shalt.err (!%p926_p7)
}
 0x5ff   :  { %642 = dma.vmem_to_hbm [thread:$0]  %s640_s29, 128, %s1213_s8, [#allocation3]  }
 0x600   :  { %930 = dma.done.wait [#allocation3], 128  }
 0x601   :  { %931 = vsyncadd [#allocation3], 4294967168 }
 0x602   :  { %646 = vsyncpa [#allocation3], 1 }

</bundles_post_ra>
